<compile_context>
chip_gen: v5e
topology: v5e:2x2
jax: 0.10.0
libtpu: 0.0.40
codegen_flags: <defaults>
</compile_context>

<pallas_src>
import functools

import numpy as np

import jax
import jax.numpy as jnp
from jax.experimental import pallas as pl
from jax.experimental.pallas import tpu as pltpu

MARGIN = 0.0
EPS = 1e-8
SELECT_RATIO = 30
LANE = 128


def _round_up(x, m):
    return ((x + m - 1) // m) * m


def _anselect_kernel(x_ref, t_ref, lpos_ref, lneg_ref, w_ref, psum_ref, pcnt_ref,
                     *, tb, n_valid):
    x = x_ref[...]
    t = t_ref[...]

    # Mask off the padded tail of the flattened, lane-padded layout.
    tile_base = pl.program_id(0) * tb
    row_ids = jax.lax.broadcasted_iota(jnp.int32, (tb, LANE), 0)
    lane_ids = jax.lax.broadcasted_iota(jnp.int32, (tb, LANE), 1)
    flat_ids = (tile_base + row_ids) * LANE + lane_ids
    valid = flat_ids < n_valid

    pos = jnp.logical_and(t > MARGIN, valid)
    neg = jnp.logical_and(t <= MARGIN, valid)

    sig = jax.nn.sigmoid(x)

    # Positive branch: weighted BCE with soft target, clamped to [eps, 1-eps].
    p = jnp.clip(sig, EPS, 1.0 - EPS)
    lpos = -(t * jnp.log(p) + (1.0 - t) * jnp.log(1.0 - p))
    lpos = jnp.where(pos, lpos, 0.0)

    # Negative branch: -(1-t)*log(max(1-sig, eps)); the (1-t) factor is applied
    # here (commutes with the later multinomial selection). w = sampling weight.
    sig_neg = 1.0 - sig
    lneg = -(1.0 - t) * jnp.log(jnp.maximum(sig_neg, EPS))
    lneg = jnp.where(neg, lneg, 0.0)
    w = jnp.where(neg, sig_neg, 0.0)

    lpos_ref[...] = lpos
    lneg_ref[...] = lneg
    w_ref[...] = w

    # Per-tile partial sums, kept vreg-shaped (8, 128): summing axis 0 of
    # (tb//8, 8, 128) is pure VPU vreg adds (no XLU cross-lane reduce here).
    psum_ref[...] = jnp.sum(lpos.reshape(tb // 8, 8, LANE), axis=0).reshape(1, 8, LANE)
    pcnt_ref[...] = jnp.sum(pos.astype(jnp.float32).reshape(tb // 8, 8, LANE),
                            axis=0).reshape(1, 8, LANE)


def anselect_maps(x, target, *, tb_rows=512):
    """Pallas part of ANSelectLoss.forward.

    Returns:
      loss_pos_map: (B, C) f32  -(t*log p + (1-t)*log(1-p)) on positives, else 0
      loss_neg_map: (B, C) f32  -(1-t)*log(max(1-sig, eps)) on negatives, else 0
      weights_map : (B, C) f32  (1 - sig) on negatives, else 0
      pos_sum     : ()     f32  sum(loss_pos_map)   (-> loss_meter['pos'])
      pos_count   : ()     f32  number of positive entries
    """
    B, C = x.shape
    N = B * C

    rows_needed = pl.cdiv(N, LANE)
    tb = min(int(tb_rows), _round_up(rows_needed, 8))
    tb = _round_up(tb, 8)                      # sublane-aligned tile rows
    num_tiles = pl.cdiv(rows_needed, tb)
    R = num_tiles * tb
    pad = R * LANE - N

    xf = jnp.pad(x.reshape(-1), (0, pad)).reshape(R, LANE)
    tf = jnp.pad(target.reshape(-1), (0, pad)).reshape(R, LANE)

    kernel = functools.partial(_anselect_kernel, tb=tb, n_valid=N)

    big = lambda i: (i, 0)
    small = lambda i: (i, 0, 0)

    lpos_f, lneg_f, w_f, psum, pcnt = pl.pallas_call(
        kernel,
        out_shape=(
            jax.ShapeDtypeStruct((R, LANE), jnp.float32),          # loss_pos map
            jax.ShapeDtypeStruct((R, LANE), jnp.float32),          # loss_neg map
            jax.ShapeDtypeStruct((R, LANE), jnp.float32),          # weights map
            jax.ShapeDtypeStruct((num_tiles, 8, LANE), jnp.float32),  # pos-sum partials
            jax.ShapeDtypeStruct((num_tiles, 8, LANE), jnp.float32),  # pos-count partials
        ),
        grid_spec=pltpu.PrefetchScalarGridSpec(
            num_scalar_prefetch=0,
            grid=(num_tiles,),
            in_specs=[
                pl.BlockSpec((tb, LANE), big),
                pl.BlockSpec((tb, LANE), big),
            ],
            out_specs=[
                pl.BlockSpec((tb, LANE), big),
                pl.BlockSpec((tb, LANE), big),
                pl.BlockSpec((tb, LANE), big),
                pl.BlockSpec((1, 8, LANE), small),
                pl.BlockSpec((1, 8, LANE), small),
            ],
        ),
        compiler_params=pltpu.CompilerParams(
            dimension_semantics=("parallel",),   # per-tile partials -> megacore OK
        ),
    )(xf, tf)

    loss_pos_map = lpos_f.reshape(-1)[:N].reshape(B, C)
    loss_neg_map = lneg_f.reshape(-1)[:N].reshape(B, C)
    weights_map = w_f.reshape(-1)[:N].reshape(B, C)
    pos_sum = jnp.sum(psum)      # single cross-lane/sublane reduce, done once here
    pos_count = jnp.sum(pcnt)
    return loss_pos_map, loss_neg_map, weights_map, pos_sum, pos_count


def anselect_forward(x, target, key, *, select_ratio=SELECT_RATIO):
    """Full ANSelectLoss.forward (reduce=None path).

    Returns (loss_vector, loss_meter_pos, loss_meter_neg).
    """
    lpos_map, lneg_map, w_map, pos_sum, _ = anselect_maps(x, target)

    # TODO(synk): torch.multinomial(replacement=False) + boolean-mask gather /
    # concat produce data-dependent shapes and use host RNG, so they have no
    # clean in-kernel Pallas equivalent; emulated host-side via Gumbel top-k.
    t_np = np.asarray(target)
    pos_mask = t_np > MARGIN
    neg_mask = ~pos_mask

    loss_pos = np.asarray(lpos_map)[pos_mask]
    loss_neg_all = np.asarray(lneg_map)[neg_mask]
    weights = np.asarray(w_map)[neg_mask]

    pos_num = int(loss_pos.shape[0])
    num_neg = int(loss_neg_all.shape[0])
    num_samples = min(select_ratio * pos_num, num_neg)

    if num_neg > 0 and num_samples > 0:
        gumbel = np.asarray(jax.random.gumbel(key, (num_neg,), dtype=jnp.float32))
        keys = np.log(np.maximum(weights, 1e-30)) + gumbel
        selected = np.argsort(-keys)[:num_samples]
        loss_neg = loss_neg_all[selected]
    else:
        loss_neg = loss_neg_all[:0]

    loss_meter_pos = float(pos_sum)               # loss_meter['pos'].update(...)
    loss_meter_neg = float(np.sum(loss_neg))      # loss_meter['neg'].update(...)
    loss = np.concatenate([loss_pos, loss_neg], axis=0)   # reduce=None -> raw vector
    return loss, loss_meter_pos, loss_meter_neg


def anselect_maps_ref(x, t):
    """Pure-JAX reference for the kernel-computed part."""
    sig = jax.nn.sigmoid(x)
    pos = t > MARGIN
    neg = jnp.logical_not(pos)
    p = jnp.clip(sig, EPS, 1.0 - EPS)
    lpos = jnp.where(pos, -(t * jnp.log(p) + (1.0 - t) * jnp.log(1.0 - p)), 0.0)
    lneg = jnp.where(neg, -(1.0 - t) * jnp.log(jnp.maximum(1.0 - sig, EPS)), 0.0)
    w = jnp.where(neg, 1.0 - sig, 0.0)
    return lpos, lneg, w, jnp.sum(lpos), jnp.sum(pos.astype(jnp.float32))


if __name__ == "__main__":
    key = jax.random.PRNGKey(0)
    k1, k2, k3 = jax.random.split(key, 3)

    B, C = 4, 32  # (BatchSize, classNum)
    x = jax.random.normal(k1, (B, C), dtype=jnp.float32)
    # Multi-label style targets in {0, 1}; guarantee at least one positive.
    target = (jax.random.uniform(k2, (B, C)) > 0.75).astype(jnp.float32)
    target = target.at[0, 0].set(1.0)

    lpos, lneg, w, pos_sum, pos_cnt = anselect_maps(x, target)
    jax.block_until_ready((lpos, lneg, w, pos_sum, pos_cnt))

    lpos_r, lneg_r, w_r, pos_sum_r, pos_cnt_r = anselect_maps_ref(x, target)
    assert jnp.allclose(lpos, lpos_r, atol=1e-5, rtol=1e-5)
    assert jnp.allclose(lneg, lneg_r, atol=1e-5, rtol=1e-5)
    assert jnp.allclose(w, w_r, atol=1e-6, rtol=1e-6)
    assert jnp.allclose(pos_sum, pos_sum_r, atol=1e-4, rtol=1e-5)
    assert int(round(float(pos_cnt))) == int(round(float(pos_cnt_r)))

    # Full forward (selection + concat done host-side).
    loss, meter_pos, meter_neg = anselect_forward(x, target, k3)
    assert loss.ndim == 1 and loss.shape[0] >= int(round(float(pos_cnt)))
    assert np.isfinite(meter_pos) and np.isfinite(meter_neg)

    print("KERNEL_OK")
</pallas_src>

<mosaic_0001>
module attributes {stable_mosaic.version = 11 : i64} {
  func.func @_anselect_kernel(%arg0: i32, %arg1: memref<8x128xf32, #tpu.memory_space<vmem>>, %arg2: memref<8x128xf32, #tpu.memory_space<vmem>>, %arg3: memref<8x128xf32, #tpu.memory_space<vmem>>, %arg4: memref<8x128xf32, #tpu.memory_space<vmem>>, %arg5: memref<8x128xf32, #tpu.memory_space<vmem>>, %arg6: memref<1x8x128xf32, #tpu.memory_space<vmem>>, %arg7: memref<1x8x128xf32, #tpu.memory_space<vmem>>) attributes {dimension_semantics = [#tpu.dimension_semantics<parallel>], iteration_bounds = array<i64: 1>, scalar_prefetch = 0 : i64, scratch_operands = 0 : i64, tpu.core_type = #tpu.core_type<tc>, window_params = [{transform_indices = @transform_0, window_bounds = array<i64: 8, 128>}, {transform_indices = @transform_1, window_bounds = array<i64: 8, 128>}, {transform_indices = @transform_2, window_bounds = array<i64: 8, 128>}, {transform_indices = @transform_3, window_bounds = array<i64: 8, 128>}, {transform_indices = @transform_4, window_bounds = array<i64: 8, 128>}, {transform_indices = @transform_5, window_bounds = array<i64: 1, 8, 128>}, {transform_indices = @transform_6, window_bounds = array<i64: 1, 8, 128>}]} {
    %c0 = arith.constant 0 : index
    %c0_0 = arith.constant 0 : index
    %0 = vector.load %arg1[%c0, %c0_0] : memref<8x128xf32, #tpu.memory_space<vmem>>, vector<8x128xf32>
    %c0_1 = arith.constant 0 : index
    %c0_2 = arith.constant 0 : index
    %1 = vector.load %arg2[%c0_1, %c0_2] : memref<8x128xf32, #tpu.memory_space<vmem>>, vector<8x128xf32>
    %c8_i32 = arith.constant 8 : i32
    %2 = arith.muli %arg0, %c8_i32 : i32
    %3 = tpu.iota {dimensions = array<i32: 0>} : vector<8x128xi32>
    %4 = tpu.iota {dimensions = array<i32: 1>} : vector<8x128xi32>
    %5 = vector.broadcast %2 : i32 to vector<8x128xi32>
    %6 = arith.addi %5, %3 : vector<8x128xi32>
    %c128_i32 = arith.constant 128 : i32
    %7 = vector.broadcast %c128_i32 : i32 to vector<8x128xi32>
    %8 = arith.muli %6, %7 : vector<8x128xi32>
    %9 = arith.addi %8, %4 : vector<8x128xi32>
    %c128_i32_3 = arith.constant 128 : i32
    %10 = vector.broadcast %c128_i32_3 : i32 to vector<8x128xi32>
    %11 = arith.cmpi slt, %9, %10 : vector<8x128xi32>
    %cst = arith.constant 0.000000e+00 : f32
    %12 = vector.broadcast %cst : f32 to vector<8x128xf32>
    %13 = arith.cmpf ogt, %1, %12 : vector<8x128xf32>
    %14 = arith.andi %13, %11 : vector<8x128xi1>
    %cst_4 = arith.constant 0.000000e+00 : f32
    %15 = vector.broadcast %cst_4 : f32 to vector<8x128xf32>
    %16 = arith.cmpf ole, %1, %15 : vector<8x128xf32>
    %17 = arith.andi %16, %11 : vector<8x128xi1>
    %18 = arith.negf %0 : vector<8x128xf32>
    %19 = math.exp %18 : vector<8x128xf32>
    %cst_5 = arith.constant 1.000000e+00 : f32
    %20 = vector.broadcast %cst_5 : f32 to vector<8x128xf32>
    %21 = arith.addf %20, %19 : vector<8x128xf32>
    %22 = arith.divf %20, %21 : vector<8x128xf32>
    %cst_6 = arith.constant 9.99999993E-9 : f32
    %cst_7 = arith.constant 1.000000e+00 : f32
    %23 = vector.broadcast %cst_6 : f32 to vector<8x128xf32>
    %24 = arith.maximumf %23, %22 : vector<8x128xf32>
    %25 = vector.broadcast %cst_7 : f32 to vector<8x128xf32>
    %26 = arith.minimumf %25, %24 : vector<8x128xf32>
    %27 = math.log %26 : vector<8x128xf32>
    %28 = arith.mulf %1, %27 : vector<8x128xf32>
    %cst_8 = arith.constant 1.000000e+00 : f32
    %29 = vector.broadcast %cst_8 : f32 to vector<8x128xf32>
    %30 = arith.subf %29, %1 : vector<8x128xf32>
    %cst_9 = arith.constant 1.000000e+00 : f32
    %31 = vector.broadcast %cst_9 : f32 to vector<8x128xf32>
    %32 = arith.subf %31, %26 : vector<8x128xf32>
    %33 = math.log %32 : vector<8x128xf32>
    %34 = arith.mulf %30, %33 : vector<8x128xf32>
    %35 = arith.addf %28, %34 : vector<8x128xf32>
    %cst_10 = arith.constant 0.000000e+00 : f32
    %36 = vector.broadcast %cst_10 : f32 to vector<8x128xf32>
    %37 = arith.subf %36, %35 : vector<8x128xf32>
    %cst_11 = arith.constant 0.000000e+00 : f32
    %38 = vector.broadcast %cst_11 : f32 to vector<8x128xf32>
    %39 = arith.select %14, %37, %38 : vector<8x128xi1>, vector<8x128xf32>
    %cst_12 = arith.constant 1.000000e+00 : f32
    %40 = vector.broadcast %cst_12 : f32 to vector<8x128xf32>
    %41 = arith.subf %40, %22 : vector<8x128xf32>
    %cst_13 = arith.constant 1.000000e+00 : f32
    %42 = vector.broadcast %cst_13 : f32 to vector<8x128xf32>
    %43 = arith.subf %42, %1 : vector<8x128xf32>
    %cst_14 = arith.constant 0.000000e+00 : f32
    %44 = vector.broadcast %cst_14 : f32 to vector<8x128xf32>
    %45 = arith.subf %44, %43 : vector<8x128xf32>
    %cst_15 = arith.constant 9.99999993E-9 : f32
    %46 = vector.broadcast %cst_15 : f32 to vector<8x128xf32>
    %47 = arith.maximumf %41, %46 : vector<8x128xf32>
    %48 = math.log %47 : vector<8x128xf32>
    %49 = arith.mulf %45, %48 : vector<8x128xf32>
    %cst_16 = arith.constant 0.000000e+00 : f32
    %50 = vector.broadcast %cst_16 : f32 to vector<8x128xf32>
    %51 = arith.select %17, %49, %50 : vector<8x128xi1>, vector<8x128xf32>
    %cst_17 = arith.constant 0.000000e+00 : f32
    %52 = vector.broadcast %cst_17 : f32 to vector<8x128xf32>
    %53 = arith.select %17, %41, %52 : vector<8x128xi1>, vector<8x128xf32>
    %c0_18 = arith.constant 0 : index
    %c0_19 = arith.constant 0 : index
    %54 = vector.load %arg3[%c0_18, %c0_19] : memref<8x128xf32, #tpu.memory_space<vmem>>, vector<8x128xf32>
    tpu.vector_store %arg3[%c0_18, %c0_19], %39 {strides = array<i32>} : memref<8x128xf32, #tpu.memory_space<vmem>>, vector<8x128xf32>,
    %c0_20 = arith.constant 0 : index
    %c0_21 = arith.constant 0 : index
    %55 = vector.load %arg4[%c0_20, %c0_21] : memref<8x128xf32, #tpu.memory_space<vmem>>, vector<8x128xf32>
    tpu.vector_store %arg4[%c0_20, %c0_21], %51 {strides = array<i32>} : memref<8x128xf32, #tpu.memory_space<vmem>>, vector<8x128xf32>,
    %c0_22 = arith.constant 0 : index
    %c0_23 = arith.constant 0 : index
    %56 = vector.load %arg5[%c0_22, %c0_23] : memref<8x128xf32, #tpu.memory_space<vmem>>, vector<8x128xf32>
    tpu.vector_store %arg5[%c0_22, %c0_23], %53 {strides = array<i32>} : memref<8x128xf32, #tpu.memory_space<vmem>>, vector<8x128xf32>,
    %57 = vector.shape_cast %39 : vector<8x128xf32> to vector<1x8x128xf32>
    %cst_24 = arith.constant dense<0.000000e+00> : vector<8x128xf32>
    %58 = vector.multi_reduction <add>, %57, %cst_24 [0] : vector<1x8x128xf32> to vector<8x128xf32>
    %59 = vector.shape_cast %58 : vector<8x128xf32> to vector<1x8x128xf32>
    %c0_25 = arith.constant 0 : index
    %c0_26 = arith.constant 0 : index
    %c0_27 = arith.constant 0 : index
    %60 = vector.load %arg6[%c0_25, %c0_26, %c0_27] : memref<1x8x128xf32, #tpu.memory_space<vmem>>, vector<1x8x128xf32>
    tpu.vector_store %arg6[%c0_25, %c0_26, %c0_27], %59 {strides = array<i32>} : memref<1x8x128xf32, #tpu.memory_space<vmem>>, vector<1x8x128xf32>,
    %61 = arith.extui %14 : vector<8x128xi1> to vector<8x128xi32>
    %62 = arith.sitofp %61 : vector<8x128xi32> to vector<8x128xf32>
    %63 = vector.shape_cast %62 : vector<8x128xf32> to vector<1x8x128xf32>
    %cst_28 = arith.constant dense<0.000000e+00> : vector<8x128xf32>
    %64 = vector.multi_reduction <add>, %63, %cst_28 [0] : vector<1x8x128xf32> to vector<8x128xf32>
    %65 = vector.shape_cast %64 : vector<8x128xf32> to vector<1x8x128xf32>
    %c0_29 = arith.constant 0 : index
    %c0_30 = arith.constant 0 : index
    %c0_31 = arith.constant 0 : index
    %66 = vector.load %arg7[%c0_29, %c0_30, %c0_31] : memref<1x8x128xf32, #tpu.memory_space<vmem>>, vector<1x8x128xf32>
    tpu.vector_store %arg7[%c0_29, %c0_30, %c0_31], %65 {strides = array<i32>} : memref<1x8x128xf32, #tpu.memory_space<vmem>>, vector<1x8x128xf32>,
    return
  }
  func.func @transform_0(%arg0: i32) -> (i32, i32) {
    %c0_i32 = arith.constant 0 : i32
    %c0_i32_0 = arith.constant 0 : i32
    return %arg0, %c0_i32 : i32, i32
  }
  func.func @transform_1(%arg0: i32) -> (i32, i32) {
    %c0_i32 = arith.constant 0 : i32
    %c0_i32_0 = arith.constant 0 : i32
    return %arg0, %c0_i32 : i32, i32
  }
  func.func @transform_2(%arg0: i32) -> (i32, i32) {
    %c0_i32 = arith.constant 0 : i32
    %c0_i32_0 = arith.constant 0 : i32
    return %arg0, %c0_i32 : i32, i32
  }
  func.func @transform_3(%arg0: i32) -> (i32, i32) {
    %c0_i32 = arith.constant 0 : i32
    %c0_i32_0 = arith.constant 0 : i32
    return %arg0, %c0_i32 : i32, i32
  }
  func.func @transform_4(%arg0: i32) -> (i32, i32) {
    %c0_i32 = arith.constant 0 : i32
    %c0_i32_0 = arith.constant 0 : i32
    return %arg0, %c0_i32 : i32, i32
  }
  func.func @transform_5(%arg0: i32) -> (i32, i32, i32) {
    %c0_i32 = arith.constant 0 : i32
    %c0_i32_0 = arith.constant 0 : i32
    %c0_i32_1 = arith.constant 0 : i32
    return %arg0, %c0_i32, %c0_i32_0 : i32, i32, i32
  }
  func.func @transform_6(%arg0: i32) -> (i32, i32, i32) {
    %c0_i32 = arith.constant 0 : i32
    %c0_i32_0 = arith.constant 0 : i32
    %c0_i32_1 = arith.constant 0 : i32
    return %arg0, %c0_i32, %c0_i32_0 : i32, i32, i32
  }
}

</mosaic_0001>

<bundles_post_ra>
// kernel: tpu_custom_call.1
= control target key start
LH: loop header
LB: loop body
LE: loop exit
PB: predicated region body
PF: predicated region fallthrough
CT: control target
= control target key end

     0   :  { %12 = vsyncpa [#allocation3], 0  ;;  %s475_s0 = inlined_call_operand.hbm [shape: f32[8,128], index: 0, kind: input, shape index: {}]   ;;  %s476_s1 = inlined_call_operand.hbm [shape: f32[8,128], index: 1, kind: input, shape index: {}]   ;;  %s477_s2 = inlined_call_operand.hbm [shape: f32[8,128], index: 2, kind: output, shape index: {0}]   ;;  %s478_s3 = inlined_call_operand.hbm [shape: f32[8,128], index: 3, kind: output, shape index: {1}]   ;;  %s479_s4 = inlined_call_operand.hbm [shape: f32[8,128], index: 4, kind: output, shape index: {2}]   ;;  %s480_s5 = inlined_call_operand.hbm [shape: f32[1,8,128], index: 5, kind: output, shape index: {3}]   ;;  %s481_s6 = inlined_call_operand.hbm [shape: f32[1,8,128], index: 6, kind: output, shape index: {4}]  }
   0x1   :  { %13 = vsyncpa [#allocation6], 0 }
   0x2   :  { %14 = vsyncpa [#allocation4], 0 }
   0x3   :  { %15 = vsyncpa [#allocation9], 0 }
   0x4   :  { %16 = vsyncpa [#allocation12], 0  ;;  %s22_s23 = sshll.u32 %s475_s0, 4  ;;  %s390_s24 = smov [#allocation2]   ;;  %s23_s23 = int_to_ptr.hbm [resolvable:$true] %s22_s23 }
   0x5   :  { %s24_s25 = sshll.u32 %s390_s24, 4  ;;  %s33_s28 = sshll.u32 %s476_s1, 4  ;;  %s25_s25 = int_to_ptr.vmem [resolvable:$true] %s24_s25  ;;  %s34_s28 = int_to_ptr.hbm [resolvable:$true] %s33_s28 }
   0x6   :  { %27 = dma.hbm_to_vmem [thread:$0]  %s23_s23, 128, %s25_s25, [#allocation3]  }
   0x7   :  { %s391_s29 = smov [#allocation5]  }
   0x8   :  { %s35_s30 = sshll.u32 %s391_s29, 4  ;;  %s36_s30 = int_to_ptr.vmem [resolvable:$true] %s35_s30 }
   0x9   :  { %38 = dma.hbm_to_vmem [thread:$0]  %s34_s28, 128, %s36_s30, [#allocation6]  }
   0xa   :  { %380 = dma.done.wait [#allocation3], 128  }
   0xb   :  { %381 = vsyncadd [#allocation3], 4294967168 }
   0xc   :  { %382 = dma.done.wait [#allocation6], 128  }
   0xd   :  { %383 = vsyncadd [#allocation6], 4294967168  ;;  %v50_v0 = vlaneseq  ;;  %v47_v1 = vld [vmem:[#allocation2] sm:$0xff]  ;;  %v48_v9 = vld [vmem:[#allocation5] sm:$0xff]  ;;  %v392_v13 = vmov 0.0   ;;  %s393_s0 = smov [#allocation8]  }
   0xe   :  { %v192_v3 = vmul.f32 -1.442695, %v47_v1  ;;  %vm59_vm1 = vcmp.gt.f32.partialorder %v48_v9, 0.0  ;;  %vm61_vm6 = vcmp.le.f32.partialorder %v48_v9, 0.0  ;;  %v87_v30 = vsub.f32 1.0, %v48_v9  ;;  %s453_s1 = sshll.u32 %s393_s0, 4  ;;  %s129_s1 = int_to_ptr.vmem [resolvable:$true] %s453_s1 }
   0xf   :  { %v51_v2 = vshrl.u32 %v50_v0, 7  ;;  %v53_v4 = vand.u32 127, %v50_v0  ;;  %s130_s9 = sshll.u32 %s478_s3, 4  ;;  %s394_s10 = smov [#allocation10]   ;;  %s131_s9 = int_to_ptr.hbm [resolvable:$true] %s130_s9 }
  0x10   :  { %202 = vpow2.f32 %v192_v3  ;;  %v96_v31 = vsub.f32 0.0, %v87_v30  ;;  %s139_s11 = sshll.u32 %s394_s10, 4  ;;  %s141_s14 = sshll.u32 %s479_s4, 4  ;;  %s140_s11 = int_to_ptr.vmem [resolvable:$true] %s139_s11  ;;  %s142_s14 = int_to_ptr.hbm [resolvable:$true] %s141_s14 }
  0x11   :  { %v56_v5 = vmul.u32 128, %v51_v2  ;;  %s395_s15 = smov [#allocation11]   ;;  %s152_s18 = sshll.u32 %s480_s5, 4  ;;  %s153_s18 = int_to_ptr.hbm [resolvable:$true] %s152_s18 }
  0x12   :  { %s150_s16 = sshll.u32 %s395_s15, 4  ;;  %s119_s21 = sshll.u32 %s477_s2, 4  ;;  %s151_s16 = int_to_ptr.vmem [resolvable:$true] %s150_s16  ;;  %s120_s21 = int_to_ptr.hbm [resolvable:$true] %s119_s21 }
  0x13   :  { %v57_v7 = vadd.s32 %v56_v5, %v53_v4  ;;  %s396_s4 = smov [#allocation7]   ;;  %s397_s23 = smov [#allocation13]  }
  0x14   :  { %s117_s22 = sshll.u32 %s396_s4, 4  ;;  %s161_s24 = sshll.u32 %s397_s23, 4  ;;  %s118_s22 = int_to_ptr.vmem [resolvable:$true] %s117_s22  ;;  %s162_s24 = int_to_ptr.vmem [resolvable:$true] %s161_s24 }
  0x15   :  { %vm58_vm0 = vcmp.lt.s32.totalorder %v57_v7, 128  ;;  %s163_s26 = sshll.u32 %s481_s6, 4  ;;  %s164_s26 = int_to_ptr.hbm [resolvable:$true] %s163_s26 }
  0x16   :  { %v203_v6 = vpop.eup %202  ;;  %vm440_vm2 = vmand %vm59_vm1, %vm58_vm0 }
  0x17   :  { %v66_v8 = vadd.f32 1.0, %v203_v6  ;;  %v193_v14 = vsel %vm440_vm2, 1.0, %v392_v13  ;;  %vm447_vm8 = vmand %vm61_vm6, %vm58_vm0 }
  0x18   :  { %111 = vst [vmem:[#allocation13] sm:$0xff] %v193_v14 }
  0x19   :  { %204 = vrcp.f32 %v66_v8  ;;  %v78_v15 = vand.u32 2147483648, %v66_v8  ;;  %vm72_vm3 = vweird.f32 %v66_v8  ;;  %v76_v17 = vand.u32 2147483647, %v66_v8 }
  0x1b   :  { %v79_v19 = vor.u32 1.1754944e-38, %v78_v15  ;;  %vm77_vm7 = vcmp.eq.f32.partialorder %v76_v17, 8.507059e+37 }
  0x1f   :  { %v205_v11 = vpop.eup %204 }
  0x20   :  { %v68_v12 = vmul.f32 %v205_v11, %v66_v8  ;;  %vm73_vm4 = vweird.f32 %v205_v11 }
  0x21   :  { %vm74_vm5 = vmor %vm72_vm3, %vm73_vm4 }
  0x22   :  { %v69_v16 = vsub.f32 1.0, %v68_v12 }
  0x24   :  { %v70_v18 = vmul.f32 %v205_v11, %v69_v16 }
  0x26   :  { %v71_v20 = vadd.f32 %v205_v11, %v70_v18 }
  0x28   :  { %v75_v21 = vsel %vm74_vm5, %v205_v11, %v71_v20 }
  0x29   :  { %v80_v23 = vsel %vm77_vm7, %v79_v19, %v75_v21 }
  0x2a   :  { %v82_v24 = vmax.f32 %v80_v23, 1e-08  ;;  %v95_v25 = vsub.f32 1.0, %v80_v23 }
  0x2c   :  { %v97_v26 = vmax.f32 %v95_v25, 1e-08  ;;  %v83_v27 = vmin.f32 %v82_v24, 1.0  ;;  %v102_v28 = vsel %vm447_vm8, %v95_v25, 0.0 }
  0x2d   :  { %105 = vst [vmem:[#allocation10] sm:$0xff] %v102_v28 }
  0x2e   :  { %206 = vlog2.f32 %v97_v26  ;;  %v88_v29 = vsub.f32 1.0, %v83_v27 }
  0x2f   :  { %208 = vlog2.f32 %v83_v27 }
  0x30   :  { %210 = vlog2.f32 %v88_v29 }
  0x34   :  { %v207_v32 = vpop.eup %206 }
  0x35   :  { %v209_v33 = vpop.eup %208  ;;  %v99_v34 = vmul.f32 0.6931472, %v207_v32 }
  0x36   :  { %v211_v35 = vpop.eup %210  ;;  %v85_v36 = vmul.f32 0.6931472, %v209_v33 }
  0x37   :  { %v100_v37 = vmul.f32 %v99_v34, %v96_v31  ;;  %v90_v38 = vmul.f32 0.6931472, %v211_v35 }
  0x38   :  { %v86_v39 = vmul.f32 %v85_v36, %v48_v9 }
  0x39   :  { %v101_v40 = vsel %vm447_vm8, %v100_v37, 0.0  ;;  %v91_v41 = vmul.f32 %v90_v38, %v87_v30 }
  0x3a   :  { %104 = vst [vmem:[#allocation8] sm:$0xff] %v101_v40 }
  0x3b   :  { %v92_v42 = vadd.f32 %v91_v41, %v86_v39  ;;  %133 = dma.vmem_to_hbm [thread:$0]  %s129_s1, 128, %s131_s9, [#allocation9]  }
  0x3c   :  { %144 = dma.vmem_to_hbm [thread:$0]  %s140_s11, 128, %s142_s14, [#allocation9]  }
  0x3d   :  { %v93_v43 = vsub.f32 0.0, %v92_v42 }
  0x3f   :  { %v94_v44 = vsel %vm440_vm2, %v93_v43, 0.0 }
  0x40   :  { %107 = vst [vmem:[#allocation11] sm:$0xff] %v94_v44 }
  0x41   :  { %103 = vst [vmem:[#allocation7] sm:$0xff] %v94_v44  ;;  %155 = dma.vmem_to_hbm [thread:$0]  %s151_s16, 128, %s153_s18, [#allocation12]  }
  0x42   :  { %122 = dma.vmem_to_hbm [thread:$0]  %s118_s22, 128, %s120_s21, [#allocation4]  }
  0x43   :  { %166 = dma.vmem_to_hbm [thread:$0]  %s162_s24, 128, %s164_s26, [#allocation12]  }
  0x44   :  { %384 = dma.done.wait [#allocation4], 128  }
  0x45   :  { %385 = vsyncadd [#allocation4], 4294967168 }
  0x46   :  { %386 = dma.done.wait [#allocation9], 256  }
  0x47   :  { %387 = vsyncadd [#allocation9], 4294967040 }
  0x48   :  { %388 = dma.done.wait [#allocation12], 256  }
  0x49   :  { %389 = vsyncadd [#allocation12], 4294967040 }
  0x4a   :  { %187 = vsyncpa [#allocation3], 1 }
  0x4b   :  { %188 = vsyncpa [#allocation6], 1 }
  0x4c   :  { %189 = vsyncpa [#allocation4], 1 }
  0x4d   :  { %190 = vsyncpa [#allocation9], 1 }
  0x4e   :  { %191 = vsyncpa [#allocation12], 1 }

</bundles_post_ra>
